<compile_context>
chip_gen: v6e
topology: v6e:2x2x1
jax: 0.10.0
libtpu: 0.0.40
codegen_flags: <defaults>
</compile_context>

<pallas_src>
import functools
import math

import jax
import jax.numpy as jnp
from jax import lax
from jax.experimental import pallas as pl
from jax.experimental.pallas import tpu as pltpu


def _round_up(x, m):
    return ((x + m - 1) // m) * m


def _pick_hw_tile(hw, max_tile=2048):
    """Largest 128-multiple divisor of hw that is <= max_tile (else whole hw)."""
    if hw <= max_tile:
        return hw
    start = max_tile - (max_tile % 128)
    for t in range(start, 0, -128):
        if hw % t == 0:
            return t
    return hw  # fall back to a single-step grid (whole hw resident)


def gcn_embd34_kernel(x_ref, at_ref, wg_ref, wbd_ref, out_ref, t_sc):
    """Grid: (hw // hw_tile,) streaming the flattened spatial axis of X.

    t_sc: (B_pad, 2*C) f32 scratch.  Lanes [0:C] hold the running max-pool,
    lanes [C:2C] hold the running sum-pool (the 1/hw factor is folded into Wbd).
    """
    B = x_ref.shape[0]
    C = x_ref.shape[1]
    B_pad, twoC = t_sc.shape
    step = pl.program_id(0)

    @pl.when(step == 0)
    def _init():
        col = lax.broadcasted_iota(jnp.int32, (B_pad, twoC), 1)
        neg = jnp.full((B_pad, twoC), jnp.finfo(jnp.float32).min, jnp.float32)
        t_sc[...] = jnp.where(col < C, neg, 0.0)        # max half -> -max_f32, sum half -> 0

    # Streaming pooling update for this spatial chunk.
    xc = x_ref[...]                                     # (B, C, hw_tile)
    t_sc[0:B, 0:C] = jnp.maximum(t_sc[0:B, 0:C], jnp.max(xc, axis=-1))
    t_sc[0:B, C:twoC] = t_sc[0:B, C:twoC] + jnp.sum(xc, axis=-1)

    @pl.when(step == pl.num_programs(0) - 1)
    def _finalize():
        t_in = t_sc[...]                                # (B_pad, 2C) = [maxpool | sumpool]
        row = lax.broadcasted_iota(jnp.int32, t_in.shape, 0)
        t_in = jnp.where(row < B, t_in, 0.0)            # keep padded batch rows finite

        # G = relu([w11.T; w13.T] @ A.T) -> (2*half, nc_pad); padded A.T cols give 0.
        g = jnp.maximum(
            jnp.dot(wg_ref[...], at_ref[...], preferred_element_type=jnp.float32), 0.0)
        # t = [xm | xsum] @ blockdiag(w12.T, w14.T/hw) = [t1 | t2]
        t = jnp.dot(t_in, wbd_ref[...], preferred_element_type=jnp.float32)
        # out = t1 @ g1 + t2 @ g2 = membd + aembd
        out_ref[...] = jnp.dot(t, g, preferred_element_type=jnp.float32).astype(out_ref.dtype)


def prepare_params(A, w11, w12, w13, w14, hw):
    """One-time weight/layout prep.  Call once at init (or per optimizer step),
    NOT per forward — this hoists the transposes/pad/stacking off the hot path.

    Returns (at, wg, wbd):
      at  : (nc, round_up(nc,128))  = A.T, zero-padded on lanes
      wg  : (2*half, nc)            = [w11.T ; w13.T]
      wbd : (2*C, 2*half)           = blockdiag(w12.T, w14.T / hw)
    """
    nc = A.shape[0]
    half = w11.shape[1]
    C = w12.shape[1]
    assert A.shape == (nc, nc)
    assert w11.shape == (nc, half) and w13.shape == (nc, half)
    assert w12.shape == (half, C) and w14.shape == (half, C)

    nc_pad = _round_up(nc, 128)
    at = jnp.pad(A.T.astype(jnp.float32), ((0, 0), (0, nc_pad - nc)))
    wg = jnp.concatenate([w11.T, w13.T], axis=0).astype(jnp.float32)
    z = jnp.zeros((C, half), jnp.float32)
    wbd = jnp.block([[w12.T.astype(jnp.float32), z],
                     [z, w14.T.astype(jnp.float32) / float(hw)]])
    return at, wg, wbd


def gcn_embd34_forward(X, at, wg, wbd, *, hw_tile=None):
    """X: (B, C, H, W); at/wg/wbd: pre-laid-out params from prepare_params()."""
    B, C, H, W = X.shape
    hw = H * W
    nc = wg.shape[1]
    nc_pad = at.shape[1]
    two_half = wg.shape[0]
    twoC = wbd.shape[0]
    assert twoC == 2 * C
    B_pad = max(8, _round_up(B, 8))

    if hw_tile is None:
        hw_tile = _pick_hw_tile(hw)
    assert hw % hw_tile == 0, f"hw_tile={hw_tile} must divide hw={hw}"
    grid = (hw // hw_tile,)

    x_flat = X.reshape(B, C, hw)

    flops = (2 * B * C * hw                      # streaming max+sum pooling
             + 2 * two_half * nc * nc_pad        # G
             + 2 * B_pad * twoC * two_half       # t
             + 2 * B_pad * two_half * nc_pad)    # out
    bytes_accessed = 4 * (B * C * hw + nc * nc_pad + two_half * nc
                          + twoC * two_half + B_pad * nc_pad)

    out_pad = pl.pallas_call(
        gcn_embd34_kernel,
        out_shape=jax.ShapeDtypeStruct((B_pad, nc_pad), jnp.float32),
        grid_spec=pltpu.PrefetchScalarGridSpec(
            num_scalar_prefetch=0,
            grid=grid,
            in_specs=[
                pl.BlockSpec((B, C, hw_tile), lambda s: (0, 0, s)),   # streamed X
                pl.BlockSpec((at.shape[0], at.shape[1]), lambda s: (0, 0)),
                pl.BlockSpec((wg.shape[0], wg.shape[1]), lambda s: (0, 0)),
                pl.BlockSpec((wbd.shape[0], wbd.shape[1]), lambda s: (0, 0)),
            ],
            out_specs=pl.BlockSpec((B_pad, nc_pad), lambda s: (0, 0)),
            scratch_shapes=[pltpu.VMEM((B_pad, twoC), jnp.float32)],
        ),
        compiler_params=pltpu.CompilerParams(dimension_semantics=("arbitrary",)),
        cost_estimate=pl.CostEstimate(flops=flops, transcendentals=0,
                                      bytes_accessed=bytes_accessed),
    )(x_flat, at, wg, wbd)

    return out_pad[:B, :nc]


def init_params(key, in_channel, numclasses):
    """Deterministic AGCN.reset_parameters(): uniform(-1/sqrt(out_f), +1/sqrt(out_f))."""
    half = in_channel // 2
    ks = jax.random.split(key, 4)

    def u(k, shape):
        stdv = 1.0 / math.sqrt(shape[1])
        return jax.random.uniform(k, shape, jnp.float32, -stdv, stdv)

    w11 = u(ks[0], (numclasses, half))     # gc11
    w12 = u(ks[1], (half, in_channel))     # gc12
    w13 = u(ks[2], (numclasses, half))     # gc13
    w14 = u(ks[3], (half, in_channel))     # gc14
    return w11, w12, w13, w14


def reference_forward(X, A, w11, w12, w13, w14):
    """Pure-JAX reference matching the PyTorch forward exactly."""
    B, C = X.shape[0], X.shape[1]
    hi = lax.Precision.HIGHEST
    xm = jnp.max(X.reshape(B, C, -1), axis=-1)
    xa = jnp.mean(X.reshape(B, C, -1), axis=-1)
    y1 = jnp.matmul(jnp.maximum(jnp.matmul(A, w11, precision=hi), 0.0), w12, precision=hi)
    y2 = jnp.matmul(jnp.maximum(jnp.matmul(A, w13, precision=hi), 0.0), w14, precision=hi)
    membd = jnp.matmul(xm, y1.T, precision=hi)
    aembd = jnp.matmul(xa, y2.T, precision=hi)
    return membd + aembd


if __name__ == "__main__":
    B, in_channel, H, W = 2, 64, 16, 16
    numclasses = 20

    key = jax.random.PRNGKey(0)
    k_x, k_a, k_p = jax.random.split(key, 3)
    X = jax.random.normal(k_x, (B, in_channel, H, W), jnp.float32)
    A = jax.random.uniform(k_a, (numclasses, numclasses), jnp.float32)
    w11, w12, w13, w14 = init_params(k_p, in_channel, numclasses)

    # One-time layout prep, hoisted OUT of the per-step path.
    at, wg, wbd = prepare_params(A, w11, w12, w13, w14, hw=H * W)

    # hw_tile=128 -> grid=(2,) so the streaming-accumulator path is exercised.
    fwd = jax.jit(functools.partial(gcn_embd34_forward, hw_tile=128))
    out = jax.block_until_ready(fwd(X, at, wg, wbd))

    ref = reference_forward(X, A, w11, w12, w13, w14)
    assert out.shape == (B, numclasses), out.shape
    max_diff = float(jnp.max(jnp.abs(out - ref)))
    assert jnp.allclose(out, ref, atol=1e-3, rtol=1e-3), (
        f"mismatch vs reference: max abs diff = {max_diff}")

    print("KERNEL_OK")
</pallas_src>

<mosaic_0001>
module attributes {stable_mosaic.version = 11 : i64} {
  func.func @gcn_embd34_kernel(%arg0: i32, %arg1: memref<2x64x128xf32, #tpu.memory_space<vmem>>, %arg2: memref<20x128xf32, #tpu.memory_space<vmem>>, %arg3: memref<64x20xf32, #tpu.memory_space<vmem>>, %arg4: memref<128x64xf32, #tpu.memory_space<vmem>>, %arg5: memref<8x128xf32, #tpu.memory_space<vmem>>, %arg6: memref<8x128xf32, #tpu.memory_space<vmem>>) attributes {dimension_semantics = [#tpu.dimension_semantics<arbitrary>], iteration_bounds = array<i64: 2>, scalar_prefetch = 0 : i64, scratch_operands = 1 : i64, tpu.core_type = #tpu.core_type<tc>, window_params = [{transform_indices = @transform_0, window_bounds = array<i64: 2, 64, 128>}, {pipeline_mode = #tpu.pipeline_mode<synchronous>, transform_indices = @transform_1, window_bounds = array<i64: 20, 128>}, {pipeline_mode = #tpu.pipeline_mode<synchronous>, transform_indices = @transform_2, window_bounds = array<i64: 64, 20>}, {pipeline_mode = #tpu.pipeline_mode<synchronous>, transform_indices = @transform_3, window_bounds = array<i64: 128, 64>}, {pipeline_mode = #tpu.pipeline_mode<synchronous>, transform_indices = @transform_4, window_bounds = array<i64: 8, 128>}]} {
    %c0_i32 = arith.constant 0 : i32
    %0 = arith.cmpi eq, %arg0, %c0_i32 : i32
    %1 = arith.extui %0 : i1 to i32
    %c0_i32_0 = arith.constant 0 : i32
    %2 = arith.cmpi ne, %1, %c0_i32_0 : i32
    scf.if %2 {
      %15 = tpu.iota {dimensions = array<i32: 1>} : vector<8x128xi32>
      %cst_12 = arith.constant -3.40282347E+38 : f32
      %16 = vector.broadcast %cst_12 : f32 to vector<8x128xf32>
      %c64_i32 = arith.constant 64 : i32
      %17 = vector.broadcast %c64_i32 : i32 to vector<8x128xi32>
      %18 = arith.cmpi slt, %15, %17 : vector<8x128xi32>
      %cst_13 = arith.constant 0.000000e+00 : f32
      %19 = vector.broadcast %cst_13 : f32 to vector<8x128xf32>
      %20 = arith.select %18, %16, %19 : vector<8x128xi1>, vector<8x128xf32>
      %c0_14 = arith.constant 0 : index
      %c0_15 = arith.constant 0 : index
      %21 = vector.load %arg6[%c0_14, %c0_15] : memref<8x128xf32, #tpu.memory_space<vmem>>, vector<8x128xf32>
      tpu.vector_store %arg6[%c0_14, %c0_15], %20 {strides = array<i32>} : memref<8x128xf32, #tpu.memory_space<vmem>>, vector<8x128xf32>,
    } else {
    }
    %c0 = arith.constant 0 : index
    %c0_1 = arith.constant 0 : index
    %c0_2 = arith.constant 0 : index
    %3 = vector.load %arg1[%c0, %c0_1, %c0_2] : memref<2x64x128xf32, #tpu.memory_space<vmem>>, vector<2x64x128xf32>
    %c0_3 = arith.constant 0 : index
    %c0_4 = arith.constant 0 : index
    %4 = vector.load %arg6[%c0_3, %c0_4] : memref<8x128xf32, #tpu.memory_space<vmem>>, vector<2x64xf32>
    %cst = arith.constant dense<0xFF800000> : vector<2x64xf32>
    %5 = vector.multi_reduction <maximumf>, %3, %cst [2] : vector<2x64x128xf32> to vector<2x64xf32>
    %6 = arith.maximumf %4, %5 : vector<2x64xf32>
    %c0_5 = arith.constant 0 : index
    %c0_6 = arith.constant 0 : index
    %7 = vector.load %arg6[%c0_5, %c0_6] : memref<8x128xf32, #tpu.memory_space<vmem>>, vector<2x64xf32>
    tpu.vector_store %arg6[%c0_5, %c0_6], %6 {strides = array<i32>} : memref<8x128xf32, #tpu.memory_space<vmem>>, vector<2x64xf32>,
    %c0_7 = arith.constant 0 : index
    %c64 = arith.constant 64 : index
    %8 = vector.load %arg6[%c0_7, %c64] : memref<8x128xf32, #tpu.memory_space<vmem>>, vector<2x64xf32>
    %cst_8 = arith.constant dense<0.000000e+00> : vector<2x64xf32>
    %9 = vector.multi_reduction <add>, %3, %cst_8 [2] : vector<2x64x128xf32> to vector<2x64xf32>
    %10 = arith.addf %8, %9 : vector<2x64xf32>
    %c0_9 = arith.constant 0 : index
    %c64_10 = arith.constant 64 : index
    %11 = vector.load %arg6[%c0_9, %c64_10] : memref<8x128xf32, #tpu.memory_space<vmem>>, vector<2x64xf32>
    tpu.vector_store %arg6[%c0_9, %c64_10], %10 {strides = array<i32>} : memref<8x128xf32, #tpu.memory_space<vmem>>, vector<2x64xf32>,
    %c1_i32 = arith.constant 1 : i32
    %12 = arith.cmpi eq, %arg0, %c1_i32 : i32
    %13 = arith.extui %12 : i1 to i32
    %c0_i32_11 = arith.constant 0 : i32
    %14 = arith.cmpi ne, %13, %c0_i32_11 : i32
    scf.if %14 {
      %c0_12 = arith.constant 0 : index
      %c0_13 = arith.constant 0 : index
      %15 = vector.load %arg6[%c0_12, %c0_13] : memref<8x128xf32, #tpu.memory_space<vmem>>, vector<8x128xf32>
      %16 = tpu.iota {dimensions = array<i32: 0>} : vector<8x128xi32>
      %c2_i32 = arith.constant 2 : i32
      %17 = vector.broadcast %c2_i32 : i32 to vector<8x128xi32>
      %18 = arith.cmpi slt, %16, %17 : vector<8x128xi32>
      %cst_14 = arith.constant 0.000000e+00 : f32
      %19 = vector.broadcast %cst_14 : f32 to vector<8x128xf32>
      %20 = arith.select %18, %15, %19 : vector<8x128xi1>, vector<8x128xf32>
      %c0_15 = arith.constant 0 : index
      %c0_16 = arith.constant 0 : index
      %21 = vector.load %arg3[%c0_15, %c0_16] : memref<64x20xf32, #tpu.memory_space<vmem>>, vector<64x20xf32>
      %c0_17 = arith.constant 0 : index
      %c0_18 = arith.constant 0 : index
      %22 = vector.load %arg2[%c0_17, %c0_18] : memref<20x128xf32, #tpu.memory_space<vmem>>, vector<20x128xf32>
      %cst_19 = arith.constant dense<0.000000e+00> : vector<64x128xf32>
      %23 = tpu.matmul %21, %22, %cst_19 {dimension_numbers = #tpu.dot_dimension_numbers<[1], [0], [0], [1], [0, 0, 1, 1], [], []>} : vector<64x20xf32>, vector<20x128xf32>, vector<64x128xf32> -> vector<64x128xf32>
      %cst_20 = arith.constant 0.000000e+00 : f32
      %24 = vector.broadcast %cst_20 : f32 to vector<64x128xf32>
      %25 = arith.maximumf %23, %24 : vector<64x128xf32>
      %c0_21 = arith.constant 0 : index
      %c0_22 = arith.constant 0 : index
      %26 = vector.load %arg4[%c0_21, %c0_22] : memref<128x64xf32, #tpu.memory_space<vmem>>, vector<128x64xf32>
      %cst_23 = arith.constant dense<0.000000e+00> : vector<8x64xf32>
      %27 = tpu.matmul %20, %26, %cst_23 {dimension_numbers = #tpu.dot_dimension_numbers<[1], [0], [0], [1], [0, 0, 1, 1], [], []>} : vector<8x128xf32>, vector<128x64xf32>, vector<8x64xf32> -> vector<8x64xf32>
      %cst_24 = arith.constant dense<0.000000e+00> : vector<8x128xf32>
      %28 = tpu.matmul %27, %25, %cst_24 {dimension_numbers = #tpu.dot_dimension_numbers<[1], [0], [0], [1], [0, 0, 1, 1], [], []>} : vector<8x64xf32>, vector<64x128xf32>, vector<8x128xf32> -> vector<8x128xf32>
      %c0_25 = arith.constant 0 : index
      %c0_26 = arith.constant 0 : index
      %29 = vector.load %arg5[%c0_25, %c0_26] : memref<8x128xf32, #tpu.memory_space<vmem>>, vector<8x128xf32>
      tpu.vector_store %arg5[%c0_25, %c0_26], %28 {strides = array<i32>} : memref<8x128xf32, #tpu.memory_space<vmem>>, vector<8x128xf32>,
    } else {
    }
    return
  }
  func.func @transform_0(%arg0: i32) -> (i32, i32, i32) {
    %c0_i32 = arith.constant 0 : i32
    %c0_i32_0 = arith.constant 0 : i32
    %c0_i32_1 = arith.constant 0 : i32
    return %c0_i32, %c0_i32_0, %arg0 : i32, i32, i32
  }
  func.func @transform_1(%arg0: i32) -> (i32, i32) {
    %c0_i32 = arith.constant 0 : i32
    %c0_i32_0 = arith.constant 0 : i32
    %c0_i32_1 = arith.constant 0 : i32
    return %c0_i32, %c0_i32_0 : i32, i32
  }
  func.func @transform_2(%arg0: i32) -> (i32, i32) {
    %c0_i32 = arith.constant 0 : i32
    %c0_i32_0 = arith.constant 0 : i32
    %c0_i32_1 = arith.constant 0 : i32
    return %c0_i32, %c0_i32_0 : i32, i32
  }
  func.func @transform_3(%arg0: i32) -> (i32, i32) {
    %c0_i32 = arith.constant 0 : i32
    %c0_i32_0 = arith.constant 0 : i32
    %c0_i32_1 = arith.constant 0 : i32
    return %c0_i32, %c0_i32_0 : i32, i32
  }
  func.func @transform_4(%arg0: i32) -> (i32, i32) {
    %c0_i32 = arith.constant 0 : i32
    %c0_i32_0 = arith.constant 0 : i32
    %c0_i32_1 = arith.constant 0 : i32
    return %c0_i32, %c0_i32_0 : i32, i32
  }
}

</mosaic_0001>

<bundles_post_ra>
// kernel: gcn_embd34_forward.1
= control target key start
LH: loop header
LB: loop body
LE: loop exit
PB: predicated region body
PF: predicated region fallthrough
CT: control target
= control target key end

     0   :  { %s1166_s15 = smov 0   ;;  %s1168_s16 = smov 0   ;;  %s1432_s0 = inlined_call_operand.vmem [shape: f32[2,64,256], index: 0, kind: input, shape index: {}]   ;;  %s1433_s1 = inlined_call_operand.vmem [shape: f32[20,128], index: 1, kind: input, shape index: {}]   ;;  %s1434_s2 = inlined_call_operand.vmem [shape: f32[64,20], index: 2, kind: input, shape index: {}]   ;;  %s1435_s3 = inlined_call_operand.vmem [shape: f32[128,64], index: 3, kind: input, shape index: {}]   ;;  %s1436_s4 = inlined_call_operand.vmem [shape: f32[8,128], index: 4, kind: output, shape index: {}]  }
   0x1   :  { %s1170_s17 = smov 0  }
   0x2 LB: > { %s956_s18 = sadd.s32 4294967295, %s1136_s17   ;;  %s1183_s19 = sadd.s32 1, %s1136_s17   ;;  %s1136_s17 = sphi %s1170_s17, %s1439_s17   ;;  %s1132_s16 = sphi %s1168_s16, %s1438_s16   ;;  %s1128_s15 = sphi %s1166_s15, %s1437_s15  }
   0x3   : > { %s18_s20 = ssub.s32 %s1136_s17, %s1183_s19  ;;  %s21_s21 = sadd.s32 1, %s1132_s16 }
   0x4   : > { %p19_p0 = scmp.eq.s32.totalorder %s18_s20, 0  ;;  %p28_p1 = scmp.ne.s32.totalorder %s1132_s16, %s1128_s15 }
   0x5   : > { %p29_p2 = scmp.eq.s32.totalorder %s1136_s17, 0  ;;  %p958_p4 = scmp.ge.s32.totalorder %s1136_s17, 2 }
   0x6   : > { %s1192_s22 = scalar_select %p19_p0, %s1132_s16, %s21_s21  }
   0x7   : > { %p30_p3 = por %p29_p2, %p28_p1  ;;  %147 = sbr.rel (%p958_p4) target bundleno = 24 (0x18), region = 28 }
   0xc   : > { %150 = sbr.rel (!%p30_p3) target bundleno = 24 (0x18), region = 32  ;;  %s152_s23 = sand.u32 (%p30_p3), 1, %s1132_s16  }
   0xd   : > { %s960_s24 = sshll.u32 (%p30_p3), %s1136_s17, 3  ;;  %s959_s25 = sshll.u32 (%p30_p3), %s152_s23, 7 }
   0xe   : > { %s1200_s28 = scalar_lea.vmem (%p30_p3), %s1432_s0, %s960_s24  ;;  %s154_s29 = scalar_lea.vmem (%p30_p3), [#allocation3], %s959_s25 }
   0xf   : > { %v215_v0 = vld [vmem:[%s1200_s28] sm:$0xff] (%p30_p3)  ;;  %v217_v1 = vld [vmem:[%s1200_s28 + $0x10] sm:$0xff] (%p30_p3) }
  0x10   : > { %v219_v2 = vld [vmem:[%s1200_s28 + $0x20] sm:$0xff] (%p30_p3)  ;;  %216 = vst [vmem:[%s154_s29] sm:$0xff] (%p30_p3), %v215_v0  ;;  %218 = vst [vmem:[%s154_s29 + $0x8] sm:$0xff] (%p30_p3), %v217_v1  ;;  %v221_v3 = vld [vmem:[%s1200_s28 + $0x30] sm:$0xff] (%p30_p3) }
  0x11   : > { %220 = vst [vmem:[%s154_s29 + $0x10] sm:$0xff] %v219_v2  ;;  %v223_v4 = vld [vmem:[%s1200_s28 + $0x40] sm:$0xff]  ;;  %v225_v5 = vld [vmem:[%s1200_s28 + $0x50] sm:$0xff]  ;;  %222 = vst [vmem:[%s154_s29 + $0x18] sm:$0xff] %v221_v3 }
  0x12   : > { %224 = vst [vmem:[%s154_s29 + $0x20] sm:$0xff] %v223_v4  ;;  %226 = vst [vmem:[%s154_s29 + $0x28] sm:$0xff] %v225_v5  ;;  %v227_v6 = vld [vmem:[%s1200_s28 + $0x60] sm:$0xff]  ;;  %v229_v7 = vld [vmem:[%s1200_s28 + $0x70] sm:$0xff] }
  0x13   : > { %v231_v8 = vld [vmem:[%s1200_s28 + $0x80] sm:$0xff]  ;;  %228 = vst [vmem:[%s154_s29 + $0x30] sm:$0xff] %v227_v6  ;;  %230 = vst [vmem:[%s154_s29 + $0x38] sm:$0xff] %v229_v7  ;;  %v233_v9 = vld [vmem:[%s1200_s28 + $0x90] sm:$0xff] }
  0x14   : > { %232 = vst [vmem:[%s154_s29 + $0x40] sm:$0xff] %v231_v8  ;;  %v235_v10 = vld [vmem:[%s1200_s28 + $0xa0] sm:$0xff]  ;;  %v237_v11 = vld [vmem:[%s1200_s28 + $0xb0] sm:$0xff]  ;;  %234 = vst [vmem:[%s154_s29 + $0x48] sm:$0xff] %v233_v9 }
  0x15   : > { %236 = vst [vmem:[%s154_s29 + $0x50] sm:$0xff] %v235_v10  ;;  %238 = vst [vmem:[%s154_s29 + $0x58] sm:$0xff] %v237_v11  ;;  %v239_v12 = vld [vmem:[%s1200_s28 + $0xc0] sm:$0xff]  ;;  %v241_v13 = vld [vmem:[%s1200_s28 + $0xd0] sm:$0xff] }
  0x16   : > { %v243_v14 = vld [vmem:[%s1200_s28 + $0xe0] sm:$0xff]  ;;  %240 = vst [vmem:[%s154_s29 + $0x60] sm:$0xff] %v239_v12  ;;  %242 = vst [vmem:[%s154_s29 + $0x68] sm:$0xff] %v241_v13  ;;  %v245_v15 = vld [vmem:[%s1200_s28 + $0xf0] sm:$0xff] }
  0x17   : > { %244 = vst [vmem:[%s154_s29 + $0x70] sm:$0xff] %v243_v14  ;;  %246 = vst [vmem:[%s154_s29 + $0x78] sm:$0xff] %v245_v15 }
  0x18 PF: > { %p961_p5 = scmp.ge.s32.totalorder %s1136_s17, 1  ;;  %p251_p6 = scmp.lt.s32.totalorder %s1136_s17, 3 }
  0x1a   : > { %p252_p7 = pnand %p961_p5, %p251_p6 }
  0x1b   : > { %s258_s30 = sand.u32 (!%p252_p7), 1, %s1128_s15   ;;  %p963_p8 = scmp.ne.s32.totalorder (!%p252_p7), %s956_s18, 0 }
  0x1c   : > { %255 = sbr.rel (%p252_p7) target bundleno = 676 (0x2a4), region = 70  ;;  %s962_s5 = sshll.u32 (!%p252_p7), %s258_s30, 7 }
  0x1d   : > { %s1221_s6 = scalar_lea.vmem (!%p252_p7), [#allocation3], %s962_s5 }
  0x21   : > { %281 = sbr.rel (%p963_p8) target bundleno = 45 (0x2d), region = 78 }
  0x26   : > { %v282_v16 = vlaneseq  ;;  %v1138_v18 = vmov 0.0  }
  0x28   : > { %v283_v17 = vand.u32 127, %v282_v16 }
  0x2a   : > { %vm284_vm0 = vcmp.lt.s32.totalorder %v283_v17, 64 }
  0x2b   : > { %v285_v19 = vsel %vm284_vm0, -3.4028235e+38, %v1138_v18 }
  0x2c   : > { %286 = vst [vmem:[#allocation2] sm:$0xff] %v285_v19 }
  0x2d PF: > { %v295_v20 = vld [vmem:[%s1221_s6 + $0x40] sm:$0xff]  ;;  %v296_v22 = vld [vmem:[%s1221_s6 + $0x48] sm:$0xff]  ;;  %v297_v24 = vld [vmem:[%s1221_s6 + $0x50] sm:$0xff]  ;;  %v352_v40 = vlaneseq  ;;  %vm363_vm1 = vcmask 130112   ;;  %vm370_vm2 = vcmask 195712   ;;  %vm377_vm3 = vcmask 261312  }
  0x2e   : > { %v287_v21 = vld [vmem:[%s1221_s6] sm:$0xff]  ;;  %320 = vmax.xlane.f32.xlu1 %v295_v20  ;;  %v288_v23 = vld [vmem:[%s1221_s6 + $0x8] sm:$0xff]  ;;  %v289_v25 = vld [vmem:[%s1221_s6 + $0x10] sm:$0xff]  ;;  %vm384_vm4 = vcmask 326912   ;;  %vm391_vm5 = vcmask 392512   ;;  %vm398_vm6 = vcmask 458112  }
  0x2f   : > { %304 = vmax.xlane.f32.xlu0 %v287_v21  ;;  %v298_v26 = vld [vmem:[%s1221_s6 + $0x58] sm:$0xff]  ;;  %v299_v28 = vld [vmem:[%s1221_s6 + $0x60] sm:$0xff]  ;;  %v300_v30 = vld [vmem:[%s1221_s6 + $0x68] sm:$0xff]  ;;  %v1241_v43 = vand.u32 127, %v352_v40  ;;  %v1245_v48 = vshrl.u32 %v352_v40, 7  ;;  %vm405_vm7 = vcmask 523712  }
  0x30   : > { %v290_v27 = vld [vmem:[%s1221_s6 + $0x18] sm:$0xff]  ;;  %v291_v29 = vld [vmem:[%s1221_s6 + $0x20] sm:$0xff]  ;;  %v292_v31 = vld [vmem:[%s1221_s6 + $0x28] sm:$0xff]  ;;  %vm446_vm8 = vcmask 1041409   ;;  %vm450_vm9 = vcmask 517120   ;;  %vm511_vm10 = vcmask 654912  }
  0x31   : > { %v301_v32 = vld [vmem:[%s1221_s6 + $0x70] sm:$0xff]  ;;  %v302_v34 = vld [vmem:[%s1221_s6 + $0x78] sm:$0xff]  ;;  %v358_v46 = vadd.s32 4294967288, %v1241_v43  ;;  %v365_v47 = vadd.s32 4294967280, %v1241_v43  ;;  %v372_v49 = vadd.s32 4294967272, %v1241_v43  ;;  %v379_v50 = vadd.s32 4294967264, %v1241_v43 }
  0x32   : > { %322 = vmax.xlane.f32.xlu1 %v296_v22  ;;  %v293_v33 = vld [vmem:[%s1221_s6 + $0x30] sm:$0xff]  ;;  %v294_v35 = vld [vmem:[%s1221_s6 + $0x38] sm:$0xff]  ;;  %v386_v54 = vadd.s32 4294967256, %v1241_v43  ;;  %v393_v56 = vadd.s32 4294967248, %v1241_v43  ;;  %v356_v57 = vsub.s32 %v1241_v43, %v1245_v48  ;;  %v400_v62 = vadd.s32 4294967240, %v1241_v43  ;;  %p964_p9 = scmp.ne.s32.totalorder %s956_s18, 1 }
  0x33   : > { %306 = vmax.xlane.f32.xlu0 %v288_v23  ;;  %v361_v53 = vsub.s32 %v358_v46, %v1245_v48  ;;  %v368_v55 = vsub.s32 %v365_v47, %v1245_v48  ;;  %v375_v58 = vsub.s32 %v372_v49, %v1245_v48  ;;  %v382_v59 = vsub.s32 %v379_v50, %v1245_v48 }
  0x34   : > { %v389_v1 = vsub.s32 %v386_v54, %v1245_v48  ;;  %v396_v4 = vsub.s32 %v393_v56, %v1245_v48  ;;  %v403_v13 = vsub.s32 %v400_v62, %v1245_v48  ;;  %v506_v49 = vadd.s32 4294967224, %v1241_v43 }
  0x35   : > { %v501_v50 = vadd.s32 4294967232, %v1241_v43  ;;  %v534_v56 = vadd.s32 4294967192, %v1241_v43  ;;  %vm518_vm11 = vcmask 720512   ;;  %vm525_vm12 = vcmask 786112  }
  0x36   : > { %324 = vmax.xlane.f32.xlu1 %v297_v24  ;;  %vm532_vm13 = vcmask 851712   ;;  %vm539_vm14 = vcmask 917312   ;;  %vm546_vm15 = vcmask 982912   ;;  %vm553_vm0 = vcmask 1048512  }
  0x37   : > { %308 = vmax.xlane.f32.xlu0 %v289_v25 }
  0x3a   : > { %326 = vmax.xlane.f32.xlu1 %v298_v26 }
  0x3b   : > { %310 = vmax.xlane.f32.xlu0 %v290_v27 }
  0x3e   : > { %328 = vmax.xlane.f32.xlu1 %v299_v28 }
  0x3f   : > { %312 = vmax.xlane.f32.xlu0 %v291_v29 }
  0x42   : > { %330 = vmax.xlane.f32.xlu1 %v300_v30 }
  0x43   : > { %314 = vmax.xlane.f32.xlu0 %v292_v31 }
  0x46   : > { %332 = vmax.xlane.f32.xlu1 %v301_v32 }
  0x47   : > { %316 = vmax.xlane.f32.xlu0 %v293_v33 }
  0x4a   : > { %334 = vmax.xlane.f32.xlu1 %v302_v34 }
  0x4b   : > { %318 = vmax.xlane.f32.xlu0 %v294_v35 }
  0x4e   : > { %455 = vadd.xlane.f32.xlu1 %v288_v23 }
  0x4f   : > { %453 = vadd.xlane.f32.xlu0 %v287_v21 }
  0x52   : > { %471 = vadd.xlane.f32.xlu1 %v296_v22 }
  0x53   : > { %469 = vadd.xlane.f32.xlu0 %v295_v20 }
  0x56   : > { %473 = vadd.xlane.f32.xlu1 %v297_v24 }
  0x57   : > { %457 = vadd.xlane.f32.xlu0 %v289_v25 }
  0x5a   : > { %475 = vadd.xlane.f32.xlu1 %v298_v26 }
  0x5b   : > { %459 = vadd.xlane.f32.xlu0 %v290_v27 }
  0x5e   : > { %477 = vadd.xlane.f32.xlu1 %v299_v28 }
  0x5f   : > { %461 = vadd.xlane.f32.xlu0 %v291_v29 }
  0x62   : > { %479 = vadd.xlane.f32.xlu1 %v300_v30 }
  0x63   : > { %463 = vadd.xlane.f32.xlu0 %v292_v31 }
  0x66   : > { %481 = vadd.xlane.f32.xlu1 %v301_v32 }
  0x67   : > { %465 = vadd.xlane.f32.xlu0 %v293_v33 }
  0x6a   : > { %483 = vadd.xlane.f32.xlu1 %v302_v34  ;;  %v303_v34 = vld [vmem:[#allocation2] sm:$0x3] }
  0x6b   : > { %467 = vadd.xlane.f32.xlu0 %v294_v35 }
  0xb7   : > { %v321_v36 = vpop.xlane.xlu1 %320 }
  0xb8   : > { %v305_v37 = vpop.xlane.xlu0 %304  ;;  %v410_v5 = vrot.slane %v321_v36, %v356_v57 }
  0xb9   : > { %v357_v6 = vrot.slane %v305_v37, %v356_v57  ;;  %v509_v57 = vsub.s32 %v506_v49, %v1245_v48 }
  0xbb   : > { %v323_v38 = vpop.xlane.xlu1 %322 }
  0xbc   : > { %v307_v39 = vpop.xlane.xlu0 %306  ;;  %v414_v63 = vrot.slane %v323_v38, %v361_v53 }
  0xbd   : > { %v362_v0 = vrot.slane %v307_v39, %v361_v53  ;;  %v527_v53 = vadd.s32 4294967200, %v1241_v43 }
  0xbe   : > { %v415_v14 = vsel %vm363_vm1, %v414_v63, %v410_v5  ;;  %v537_v63 = vsub.s32 %v534_v56, %v1245_v48 }
  0xbf   : > { %v325_v41 = vpop.xlane.xlu1 %324  ;;  %v364_v15 = vsel %vm363_vm1, %v362_v0, %v357_v6  ;;  %v530_v62 = vsub.s32 %v527_v53, %v1245_v48  ;;  %vm597_vm1 = vcmask 1041920  }
  0xc0   : > { %v309_v42 = vpop.xlane.xlu0 %308  ;;  %v419_v2 = vrot.slane %v325_v41, %v368_v55 }
  0xc1   : > { %v369_v3 = vrot.slane %v309_v42, %v368_v55 }
  0xc2   : > { %v420_v18 = vsel %vm370_vm2, %v419_v2, %v415_v14  ;;  %v548_v2 = vadd.s32 4294967176, %v1241_v43 }
  0xc3   : > { %v327_v44 = vpop.xlane.xlu1 %326  ;;  %v371_v19 = vsel %vm370_vm2, %v369_v3, %v364_v15 }
  0xc4   : > { %v311_v45 = vpop.xlane.xlu0 %310  ;;  %v424_v7 = vrot.slane %v327_v44, %v375_v58 }
  0xc5   : > { %v376_v8 = vrot.slane %v311_v45, %v375_v58  ;;  %v504_v58 = vsub.s32 %v501_v50, %v1245_v48 }
  0xc6   : > { %v425_v22 = vsel %vm377_vm3, %v424_v7, %v420_v18 }
  0xc7   : > { %v329_v51 = vpop.xlane.xlu1 %328  ;;  %v378_v23 = vsel %vm377_vm3, %v376_v8, %v371_v19 }
  0xc8   : > { %v313_v52 = vpop.xlane.xlu0 %312  ;;  %v429_v9 = vrot.slane %v329_v51, %v382_v59  ;;  %v513_v51 = vadd.s32 4294967216, %v1241_v43 }
  0xc9   : > { %v383_v10 = vrot.slane %v313_v52, %v382_v59  ;;  %v520_v52 = vadd.s32 4294967208, %v1241_v43 }
  0xca   : > { %v430_v24 = vsel %vm384_vm4, %v429_v9, %v425_v22  ;;  %v516_v59 = vsub.s32 %v513_v51, %v1245_v48 }
  0xcb   : > { %v331_v60 = vpop.xlane.xlu1 %330  ;;  %v385_v25 = vsel %vm384_vm4, %v383_v10, %v378_v23 }
  0xcc   : > { %v315_v61 = vpop.xlane.xlu0 %314  ;;  %v434_v16 = vrot.slane %v331_v60, %v389_v1  ;;  %v541_v60 = vadd.s32 4294967184, %v1241_v43  ;;  %v551_v43 = vsub.s32 %v548_v2, %v1245_v48 }
  0xcd   : > { %v390_v17 = vrot.slane %v315_v61, %v389_v1  ;;  %v523_v61 = vsub.s32 %v520_v52, %v1245_v48 }
  0xce   : > { %v435_v28 = vsel %vm391_vm5, %v434_v16, %v430_v24  ;;  %v544_v9 = vsub.s32 %v541_v60, %v1245_v48 }
  0xcf   : > { %v333_v11 = vpop.xlane.xlu1 %332  ;;  %v392_v29 = vsel %vm391_vm5, %v390_v17, %v385_v25 }
  0xd0   : > { %v317_v12 = vpop.xlane.xlu0 %316  ;;  %v439_v20 = vrot.slane %v333_v11, %v396_v4 }
  0xd1   : > { %v397_v21 = vrot.slane %v317_v12, %v396_v4 }
  0xd2   : > { %v440_v32 = vsel %vm398_vm6, %v439_v20, %v435_v28 }
  0xd3   : > { %v335_v26 = vpop.xlane.xlu1 %334  ;;  %v399_v33 = vsel %vm398_vm6, %v397_v21, %v392_v29 }
  0xd4   : > { %v319_v27 = vpop.xlane.xlu0 %318  ;;  %v444_v30 = vrot.slane %v335_v26, %v403_v13 }
  0xd5   : > { %v404_v31 = vrot.slane %v319_v27, %v403_v13 }
  0xd6   : > { %v445_v35 = vsel %vm405_vm7, %v444_v30, %v440_v32 }
  0xd7   : > { %v406_v36 = vsel %vm405_vm7, %v404_v31, %v399_v33  ;;  %v456_v38 = vpop.xlane.xlu1 %455 }
  0xd8   : > { %v447_v37 = vsel %vm446_vm8, %v445_v35, %v406_v36  ;;  %v454_v39 = vpop.xlane.xlu0 %453  ;;  %v510_v3 = vrot.slane %v456_v38, %v509_v57 }
  0xd9   : > { %v449_v40 = vmax.f32 %v303_v34, %v447_v37  ;;  %v505_v4 = vrot.slane %v454_v39, %v504_v58 }
  0xdb   : > { %451 = vst.msk [vmem:[#allocation2] sm:$0x3] %vm450_vm9, %v449_v40  ;;  %v472_v41 = vpop.xlane.xlu1 %471  ;;  %v512_v16 = vsel %vm511_vm10, %v510_v3, %v505_v4 }
  0xdc   : > { %v470_v42 = vpop.xlane.xlu0 %469  ;;  %v562_v5 = vrot.slane %v472_v41, %v509_v57 }
  0xdd   : > { %v558_v6 = vrot.slane %v470_v42, %v504_v58 }
  0xdf   : > { %v474_v44 = vpop.xlane.xlu1 %473  ;;  %v563_v17 = vsel %vm511_vm10, %v562_v5, %v558_v6 }
  0xe0   : > { %v458_v45 = vpop.xlane.xlu0 %457  ;;  %v567_v7 = vrot.slane %v474_v44, %v516_v59 }
  0xe1   : > { %v517_v8 = vrot.slane %v458_v45, %v516_v59 }
  0xe2   : > { %v568_v20 = vsel %vm518_vm11, %v567_v7, %v563_v17  ;;  %v452_v38 = vld [vmem:[#allocation2] sm:$0x3] }
  0xe3   : > { %v476_v46 = vpop.xlane.xlu1 %475  ;;  %v519_v21 = vsel %vm518_vm11, %v517_v8, %v512_v16 }
  0xe4   : > { %v460_v47 = vpop.xlane.xlu0 %459  ;;  %v572_v10 = vrot.slane %v476_v46, %v523_v61 }
  0xe5   : > { %v524_v11 = vrot.slane %v460_v47, %v523_v61 }
  0xe6   : > { %v573_v24 = vsel %vm525_vm12, %v572_v10, %v568_v20 }
  0xe7   : > { %v478_v54 = vpop.xlane.xlu1 %477  ;;  %v526_v25 = vsel %vm525_vm12, %v524_v11, %v519_v21 }
  0xe8   : > { %v462_v55 = vpop.xlane.xlu0 %461  ;;  %v577_v12 = vrot.slane %v478_v54, %v530_v62 }
  0xe9   : > { %v531_v13 = vrot.slane %v462_v55, %v530_v62 }
  0xea   : > { %v578_v26 = vsel %vm532_vm13, %v577_v12, %v573_v24 }
  0xeb   : > { %v480_v0 = vpop.xlane.xlu1 %479  ;;  %v533_v27 = vsel %vm532_vm13, %v531_v13, %v526_v25 }
  0xec   : > { %v464_v1 = vpop.xlane.xlu0 %463  ;;  %v582_v18 = vrot.slane %v480_v0, %v537_v63 }
  0xed   : > { %v538_v19 = vrot.slane %v464_v1, %v537_v63 }
  0xee   : > { %v583_v30 = vsel %vm539_vm14, %v582_v18, %v578_v26 }
  0xef   : > { %v482_v14 = vpop.xlane.xlu1 %481  ;;  %v540_v31 = vsel %vm539_vm14, %v538_v19, %v533_v27 }
  0xf0   : > { %v466_v15 = vpop.xlane.xlu0 %465  ;;  %v587_v22 = vrot.slane %v482_v14, %v544_v9 }
  0xf1   : > { %v545_v23 = vrot.slane %v466_v15, %v544_v9 }
  0xf2   : > { %v588_v34 = vsel %vm546_vm15, %v587_v22, %v583_v30 }
  0xf3   : > { %v484_v28 = vpop.xlane.xlu1 %483  ;;  %v547_v35 = vsel %vm546_vm15, %v545_v23, %v540_v31 }
  0xf4   : > { %v468_v29 = vpop.xlane.xlu0 %467  ;;  %v592_v32 = vrot.slane %v484_v28, %v551_v43 }
  0xf5   : > { %v552_v33 = vrot.slane %v468_v29, %v551_v43 }
  0xf6   : > { %v593_v36 = vsel %vm553_vm0, %v592_v32, %v588_v34 }
  0xf7   : > { %v554_v37 = vsel %vm553_vm0, %v552_v33, %v547_v35  ;;  %602 = sbr.rel (%p964_p9) target bundleno = 676 (0x2a4), region = 82 }
  0xf8   : > { %v594_v39 = vsel %vm446_vm8, %v593_v36, %v554_v37 }
  0xf9   : > { %v596_v40 = vadd.f32 %v594_v39, %v452_v38 }
  0xfb   : > { %598 = vst.msk [vmem:[#allocation2] sm:$0x3] %vm597_vm1, %v596_v40 }
  0xfc   : > { %v618_v41 = vld [vmem:[%s1433_s1 + $0x10] sm:$0xf]  ;;  %vm644_vm2 = vcmask 1043456   ;;  %v617_v42 = vld [vmem:[%s1433_s1 + $0x8] sm:$0xff]  ;;  %v776_v44 = vld [vmem:[%s1435_s3 + $0x78] sm:$0xff]  ;;  %v1139_v45 = vmov 0.0  }
  0xfd   : > { %1015 = vmatprep.subr.msk.mxu0 %vm644_vm2, %v618_v41  ;;  %1033 = vmatprep.subr.mxu1 %v1139_v45  ;;  %v608_v46 = vld [vmem:[%s1434_s2] sm:$0xff]  ;;  %vm619_vm3 = vcmask 162816   ;;  %v775_v49 = vld [vmem:[%s1435_s3 + $0x70] sm:$0xff]  ;;  %v609_v50 = vld [vmem:[%s1434_s2 + $0x8] sm:$0xff]  ;;  %vm1140_vm4 = vmmov 0   ;;  %vm606_vm5 = vcmp.lt.s32.totalorder %v1245_v48, 2 }
  0xfe   : > { %1016 = vmatpush3.msk.msra.mxu0 %vm644_vm2, %v618_v41  ;;  %1034 = vmatpush3.msra.mxu1 %v776_v44  ;;  %v616_v47 = vld [vmem:[%s1433_s1] sm:$0xff]  ;;  %v774_v51 = vld [vmem:[%s1435_s3 + $0x68] sm:$0xff]  ;;  %v610_v52 = vld [vmem:[%s1434_s2 + $0x10] sm:$0xff]  ;;  %vm847_vm6 = vcmask 523264  }
  0xff   : > { %1017 = vmatprep.subr.mxu0 %v617_v42  ;;  %1035 = vmatprep.subr.mxu1 %v1139_v45  ;;  %v773_v53 = vld [vmem:[%s1435_s3 + $0x60] sm:$0xff]  ;;  %v611_v54 = vld [vmem:[%s1434_s2 + $0x18] sm:$0xff]  ;;  %v771_v57 = vld [vmem:[%s1435_s3 + $0x50] sm:$0xff] }
 0x100   : > { %1018 = vmatpush3.msra.mxu0 %v617_v42  ;;  %1021 = vmatprep.mubr.msk.f32.mxu0 %vm619_vm3, %v608_v46  ;;  %v772_v55 = vld [vmem:[%s1435_s3 + $0x58] sm:$0xff]  ;;  %v612_v56 = vld [vmem:[%s1434_s2 + $0x20] sm:$0xff]  ;;  %v613_v58 = vld [vmem:[%s1434_s2 + $0x28] sm:$0xff] }
 0x101   : > { %1019 = vmatprep.subr.mxu0 %v616_v47  ;;  %1036 = vmatpush3.msra.mxu1 %v775_v49  ;;  %v770_v59 = vld [vmem:[%s1435_s3 + $0x48] sm:$0xff]  ;;  %v614_v60 = vld [vmem:[%s1434_s2 + $0x30] sm:$0xff]  ;;  %v769_v61 = vld [vmem:[%s1435_s3 + $0x40] sm:$0xff] }
 0x102   : > { %1020 = vmatpush3.msra.mxu0 %v616_v47  ;;  %1037 = vmatprep.subr.mxu1 %v1139_v45  ;;  %v615_v62 = vld [vmem:[%s1434_s2 + $0x38] sm:$0xff]  ;;  %v767_v0 = vld [vmem:[%s1435_s3 + $0x30] sm:$0xff]  ;;  %v766_v1 = vld [vmem:[%s1435_s3 + $0x28] sm:$0xff] }
 0x103   : > { %1022 = vmatmul.mubr.msk.f32.vlgmr.msra.gmra.mxu0 %vm619_vm3, %v609_v50  ;;  %1038 = vmatpush3.msra.mxu1 %v774_v51  ;;  %v768_v63 = vld [vmem:[%s1435_s3 + $0x38] sm:$0xff]  ;;  %v765_v2 = vld [vmem:[%s1435_s3 + $0x20] sm:$0xff]  ;;  %v763_v4 = vld [vmem:[%s1435_s3 + $0x10] sm:$0xff] }
 0x104   : > { %1039 = vmatprep.subr.mxu1 %v1139_v45  ;;  %1024 = vmatprep.mubr.msk.f32.mxu0 %vm619_vm3, %v610_v52  ;;  %v764_v3 = vld [vmem:[%s1435_s3 + $0x18] sm:$0xff]  ;;  %v762_v5 = vld [vmem:[%s1435_s3 + $0x8] sm:$0xff]  ;;  %v761_v6 = vld [vmem:[%s1435_s3] sm:$0xff] }
 0x105   : > { %1040 = vmatpush3.msra.mxu1 %v773_v53  ;;  %1065 = vmatprep.mubr.msk.f32.mxu1 %vm1140_vm4, %v1139_v45  ;;  %v603_v7 = vld [vmem:[#allocation2] sm:$0xff] }
 0x106   : > { %1041 = vmatprep.subr.mxu1 %v1139_v45  ;;  %1068 = vmatprep.subr.mxu0 %v1139_v45 }
 0x107   : > { %1025 = vmatmul.mubr.msk.f32.gmra.mxu0 %vm619_vm3, %v611_v54  ;;  %1042 = vmatpush3.msra.mxu1 %v772_v55 }
 0x108   : > { %1043 = vmatprep.subr.mxu1 %v1139_v45  ;;  %1027 = vmatprep.mubr.msk.f32.mxu0 %vm619_vm3, %v612_v56 }
 0x109   : > { %1044 = vmatpush3.msra.mxu1 %v771_v57 }
 0x10a   : > { %1045 = vmatprep.subr.mxu1 %v1139_v45 }
 0x10b   : > { %1028 = vmatmul.mubr.msk.f32.gmra.mxu0 %vm619_vm3, %v613_v58  ;;  %1046 = vmatpush3.msra.mxu1 %v770_v59 }
 0x10c   : > { %1047 = vmatprep.subr.mxu1 %v1139_v45  ;;  %1030 = vmatprep.mubr.msk.f32.mxu0 %vm619_vm3, %v614_v60 }
 0x10d   : > { %1048 = vmatpush3.msra.mxu1 %v769_v61 }
 0x10e   : > { %1049 = vmatprep.subr.mxu1 %v1139_v45 }
 0x10f   : > { %1031 = vmatmul.mubr.msk.f32.gmra.mxu0 %vm619_vm3, %v615_v62  ;;  %1050 = vmatpush3.msra.mxu1 %v768_v63 }
 0x110   : > { %1051 = vmatprep.subr.mxu1 %v1139_v45  ;;  %1084 = vmatprep.mubr.msk.f32.mxu0 %vm1140_vm4, %v1139_v45 }
 0x111   : > { %1052 = vmatpush3.msra.mxu1 %v767_v0 }
 0x112   : > { %1053 = vmatprep.subr.mxu1 %v1139_v45 }
 0x113   : > { %1054 = vmatpush3.msra.mxu1 %v766_v1 }
 0x114   : > { %1055 = vmatprep.subr.mxu1 %v1139_v45 }
 0x115   : > { %1056 = vmatpush3.msra.mxu1 %v765_v2 }
 0x116   : > { %1057 = vmatprep.subr.mxu1 %v1139_v45 }
 0x117   : > { %1058 = vmatpush3.msra.mxu1 %v764_v3 }
 0x118   : > { %1059 = vmatprep.subr.mxu1 %v1139_v45 }
 0x119   : > { %1060 = vmatpush3.msra.mxu1 %v763_v4 }
 0x11a   : > { %1061 = vmatprep.subr.mxu1 %v1139_v45 }
 0x11b   : > { %1062 = vmatpush3.msra.mxu1 %v762_v5 }
 0x11c   : > { %1063 = vmatprep.subr.mxu1 %v1139_v45 }
 0x11d   : > { %1064 = vmatpush3.msra.mxu1 %v761_v6 }
 0x11e   : > { %1066 = vmatmul.mubr.msk.f32.vlgmr.msra.gmra.mxu1 %vm606_vm5, %v603_v7 }
 0x1c3   : > { %v1023_v8 = vpop.f32.mrf.mxu0 }
 0x1c4   : > { %v754_v20 = vmax.f32 %v1023_v8, 0.0 }
 0x1c5   : > { %v714_v9 = vpop.f32.mrf.mxu0 }
 0x1c6   : > { %v753_v21 = vmax.f32 %v714_v9, 0.0 }
 0x1c7   : > { %v1026_v10 = vpop.f32.mrf.mxu0 }
 0x1c8   : > { %v756_v18 = vmax.f32 %v1026_v10, 0.0 }
 0x1c9   : > { %v724_v11 = vpop.f32.mrf.mxu0 }
 0x1ca   : > { %v755_v19 = vmax.f32 %v724_v11, 0.0 }
 0x1cb   : > { %v1029_v12 = vpop.f32.mrf.mxu0 }
 0x1cc   : > { %v758_v17 = vmax.f32 %v1029_v12, 0.0 }
 0x1cd   : > { %v734_v13 = vpop.f32.mrf.mxu0 }
 0x1ce   : > { %v757_v48 = vmax.f32 %v734_v13, 0.0 }
 0x1cf   : > { %v1032_v14 = vpop.f32.mrf.mxu0 }
 0x1d0   : > { %v760_v15 = vmax.f32 %v1032_v14, 0.0 }
 0x1d1   : > { %v744_v43 = vpop.f32.mrf.mxu0 }
 0x1d2   : > { %v759_v16 = vmax.f32 %v744_v43, 0.0  ;;  %1069 = vmatpush3.msra.mxu0 %v760_v15 }
 0x1d3   : > { %1070 = vmatprep.subr.mxu0 %v1139_v45 }
 0x1d4   : > { %1071 = vmatpush3.msra.mxu0 %v759_v16 }
 0x1d5   : > { %1072 = vmatprep.subr.mxu0 %v1139_v45 }
 0x1d6   : > { %1073 = vmatpush3.msra.mxu0 %v758_v17 }
 0x1d7   : > { %1074 = vmatprep.subr.mxu0 %v1139_v45 }
 0x1d8   : > { %1075 = vmatpush3.msra.mxu0 %v757_v48 }
 0x1d9   : > { %1076 = vmatprep.subr.mxu0 %v1139_v45 }
 0x1da   : > { %1077 = vmatpush3.msra.mxu0 %v756_v18 }
 0x1db   : > { %1078 = vmatprep.subr.mxu0 %v1139_v45 }
 0x1dc   : > { %1079 = vmatpush3.msra.mxu0 %v755_v19 }
 0x1dd   : > { %1080 = vmatprep.subr.mxu0 %v1139_v45 }
 0x1de   : > { %1081 = vmatpush3.msra.mxu0 %v754_v20  ;;  %v843_v22 = vpop.f32.mrf.mxu1 }
 0x1df   : > { %1082 = vmatprep.subr.mxu0 %v1139_v45 }
 0x1e0   : > { %1083 = vmatpush3.msra.mxu0 %v753_v21  ;;  %v1067_v23 = vpop.f32.mrf.mxu1 }
 0x1e1   : > { %1085 = vmatmul.mubr.msk.f32.vlgmr.msra.gmra.mxu0 %vm847_vm6, %v843_v22 }
 0x2a1   : > { %v917_v24 = vpop.f32.mrf.mxu0 }
 0x2a2   : > { %921 = vst [vmem:[%s1436_s4] sm:$0xff] %v917_v24 }
 0x2a3   : > { %v1086_v25 = vpop.f32.mrf.mxu0 }
 0x2a4 PF: > { %p11_p10 = scmp.ge.s32.totalorder %s1183_s19, 4   ;;  %s1437_s15 = smov %s1132_s16 }
 0x2a5   : > { %s1438_s16 = smov %s1192_s22  ;;  %s1439_s17 = smov %s1183_s19 }
 0x2a6   :  { %13 = sbr.rel (!%p11_p10) target bundleno = 2 (0x2), region = 113 }

</bundles_post_ra>
